<compile_context>
chip_gen: v5e
topology: v5e:2x2
jax: 0.10.0
libtpu: 0.0.40
codegen_flags: <defaults>
</compile_context>

<pallas_src>
import jax
import jax.numpy as jnp
from jax.experimental import pallas as pl
from jax.experimental.pallas import tpu as pltpu


def _rope_kernel(cos_ref, sin_ref, q_ref, k_ref, qo_ref, ko_ref):
    # cos_ref / sin_ref : (1, St, D)   (sin already carries the rotate_half sign)
    # q_ref             : (1, Hq, St, D) ;  k_ref : (1, Hk, St, D)
    D = q_ref.shape[-1]
    half = D // 2
    cos = cos_ref[...][:, None, :, :]          # (1, 1, St, D) -> broadcast over heads
    sin = sin_ref[...][:, None, :, :]

    def apply(x_ref, o_ref):
        x = x_ref[...]                                   # input dtype, no upcast
        rolled = pltpu.roll(x, shift=half, axis=3)       # [x2, x1]  (XLU slot, ~free)
        o_ref[...] = (x * cos + rolled * sin).astype(o_ref.dtype)

    apply(q_ref, qo_ref)
    apply(k_ref, ko_ref)


def _round_up(x, m):
    return ((x + m - 1) // m) * m


def _cdiv(a, b):
    return (a + b - 1) // b


def _pick_seq_tiling(S, Hq, Hk, D, in_isz, tbl_isz, B, budget_bytes=24 * 1024 * 1024):
    """Pick (seq_tile, padded_seq_len). Double-buffered in/out blocks plus in-kernel
    temporaries are kept within budget_bytes (< the 32 MiB scoped limit we request,
    which is itself well under v7x's 64 MiB physical VMEM)."""
    sub = max(8, 32 // in_isz)                    # sublane alignment: 8 f32, 16 bf16
    s8 = _round_up(S, sub)
    qk_row = (Hq + Hk) * D * in_isz               # q+k bytes per seq row (in OR out)
    tbl_row = 2 * D * tbl_isz                     # cos + sin per seq row
    per_row = 2 * (2 * qk_row + tbl_row)          # double-buffered in + out blocks
    per_row += 3 * (Hq + Hk) * D * max(in_isz, tbl_isz)   # in-kernel temporaries
    st_max = max(sub, min(s8, (budget_bytes // per_row) // sub * sub))
    # Prefer a tile that divides the aligned sequence exactly (no pad/slice copies).
    st = None
    for cand in range(st_max, sub - 1, -sub):
        if s8 % cand == 0:
            st = cand
            break
    if st is None or st < max(sub, st_max // 2):
        st = st_max                               # pad rather than shrink tiles a lot
    n_tiles = _cdiv(s8, st)
    # v7x has 2 TensorCores per chip: ensure the parallel grid has >= 2 steps.
    if B * n_tiles < 2 and s8 >= 2 * sub:
        n_tiles = 2
        st = _round_up(_cdiv(s8, n_tiles), sub)
    return st, st * n_tiles


def qwen2_rotary_embedding(query, key, position_ids, *, rope_theta=1000000.0):
    """query: (B, Hq, S, D), key: (B, Hk, S, D), position_ids: (B, S) int.
    Returns (q_rot, k_rot) with the same shapes/dtypes as the inputs."""
    B, Hq, S, D = query.shape
    Bk, Hk, Sk, Dk = key.shape
    assert (Bk, Sk, Dk) == (B, S, D), "query/key batch, seq, head_dim must match"
    assert D % 2 == 0, "head_dim must be even for RoPE"

    # Tables built in fp32 (as HF does), then cast to the compute/table dtype.
    if query.dtype in (jnp.dtype(jnp.bfloat16), jnp.dtype(jnp.float32)):
        tbl_dtype = query.dtype
    else:
        tbl_dtype = jnp.float32
    inv_freq = 1.0 / (rope_theta ** (jnp.arange(0, D, 2, dtype=jnp.float32) / D))
    freqs = position_ids.astype(jnp.float32)[:, :, None] * inv_freq[None, None, :]
    cos_h, sin_h = jnp.cos(freqs), jnp.sin(freqs)
    cos = jnp.concatenate([cos_h, cos_h], axis=-1).astype(tbl_dtype)       # (B, S, D)
    # rotate_half(x) * sin  ==  roll(x, D/2) * concat([-sin_h, sin_h]) : fold sign here.
    sin = jnp.concatenate([-sin_h, sin_h], axis=-1).astype(tbl_dtype)      # (B, S, D)

    in_isz = jnp.dtype(query.dtype).itemsize
    tbl_isz = jnp.dtype(tbl_dtype).itemsize
    st, s_pad = _pick_seq_tiling(S, Hq, Hk, D, in_isz, tbl_isz, B)

    if s_pad != S:
        pad = s_pad - S
        query_in = jnp.pad(query, ((0, 0), (0, 0), (0, pad), (0, 0)))
        key_in = jnp.pad(key, ((0, 0), (0, 0), (0, pad), (0, 0)))
        cos = jnp.pad(cos, ((0, 0), (0, pad), (0, 0)))
        sin = jnp.pad(sin, ((0, 0), (0, pad), (0, 0)))
    else:
        query_in, key_in = query, key

    grid = (B, s_pad // st)

    bytes_accessed = (2 * (Hq + Hk) * B * S * D * in_isz    # q/k read + write
                      + 2 * B * S * D * tbl_isz)            # cos/sin read
    flops = 3 * (Hq + Hk) * B * S * D                       # 2 mul + 1 add per element

    q_out, k_out = pl.pallas_call(
        _rope_kernel,
        out_shape=(jax.ShapeDtypeStruct(query_in.shape, query.dtype),
                   jax.ShapeDtypeStruct(key_in.shape, key.dtype)),
        grid_spec=pltpu.PrefetchScalarGridSpec(
            num_scalar_prefetch=0,
            grid=grid,
            in_specs=[
                pl.BlockSpec((1, st, D), lambda b, s: (b, s, 0)),          # cos
                pl.BlockSpec((1, st, D), lambda b, s: (b, s, 0)),          # sin (signed)
                pl.BlockSpec((1, Hq, st, D), lambda b, s: (b, 0, s, 0)),   # query
                pl.BlockSpec((1, Hk, st, D), lambda b, s: (b, 0, s, 0)),   # key
            ],
            out_specs=[
                pl.BlockSpec((1, Hq, st, D), lambda b, s: (b, 0, s, 0)),
                pl.BlockSpec((1, Hk, st, D), lambda b, s: (b, 0, s, 0)),
            ],
        ),
        compiler_params=pltpu.CompilerParams(
            dimension_semantics=("parallel", "parallel"),
            vmem_limit_bytes=32 * 1024 * 1024,
        ),
        cost_estimate=pl.CostEstimate(
            flops=flops, transcendentals=0, bytes_accessed=bytes_accessed),
    )(cos, sin, query_in, key_in)

    if s_pad != S:
        q_out = q_out[:, :, :S, :]
        k_out = k_out[:, :, :S, :]
    return q_out, k_out


def _reference(query, key, position_ids, rope_theta=1000000.0):
    D = query.shape[-1]
    inv_freq = 1.0 / (rope_theta ** (jnp.arange(0, D, 2, dtype=jnp.float32) / D))
    freqs = position_ids.astype(jnp.float32)[:, :, None] * inv_freq[None, None, :]
    emb = jnp.concatenate([freqs, freqs], axis=-1)
    cos = jnp.cos(emb)[:, None, :, :].astype(query.dtype)
    sin = jnp.sin(emb)[:, None, :, :].astype(query.dtype)

    def rot_half(x):
        h = x.shape[-1] // 2
        return jnp.concatenate([-x[..., h:], x[..., :h]], axis=-1)

    q_e = (query * cos + rot_half(query) * sin).astype(query.dtype)
    k_e = (key * cos.astype(key.dtype) + rot_half(key) * sin.astype(key.dtype)).astype(key.dtype)
    return q_e, k_e


if __name__ == "__main__":
    keys = jax.random.split(jax.random.PRNGKey(0), 4)

    # Test 1: small GQA-style shapes, fp32.
    B, Hq, Hk, S, D = 2, 4, 2, 8, 32
    query = jax.random.normal(keys[0], (B, Hq, S, D), dtype=jnp.float32)
    key = jax.random.normal(keys[1], (B, Hk, S, D), dtype=jnp.float32)
    position_ids = jnp.broadcast_to(jnp.arange(S, dtype=jnp.int32)[None, :], (B, S))

    q_rot, k_rot = jax.block_until_ready(qwen2_rotary_embedding(query, key, position_ids))
    q_ref, k_ref = _reference(query, key, position_ids)
    assert q_rot.shape == query.shape and q_rot.dtype == query.dtype
    assert k_rot.shape == key.shape and k_rot.dtype == key.dtype
    assert jnp.allclose(q_rot, q_ref, atol=1e-5, rtol=1e-5), "fp32 q mismatch vs reference"
    assert jnp.allclose(k_rot, k_ref, atol=1e-5, rtol=1e-5), "fp32 k mismatch vs reference"

    # Test 2: real Qwen2 head_dim (128), bf16, B=1 (exercises the 2-tile split + roll direction).
    B2, Hq2, Hk2, S2, D2 = 1, 2, 1, 32, 128
    q2 = jax.random.normal(keys[2], (B2, Hq2, S2, D2), dtype=jnp.bfloat16)
    k2 = jax.random.normal(keys[3], (B2, Hk2, S2, D2), dtype=jnp.bfloat16)
    pos2 = jnp.broadcast_to(jnp.arange(S2, dtype=jnp.int32)[None, :], (B2, S2))
    q2_rot, k2_rot = jax.block_until_ready(qwen2_rotary_embedding(q2, k2, pos2))
    q2_ref, k2_ref = _reference(q2, k2, pos2)
    assert q2_rot.shape == q2.shape and q2_rot.dtype == jnp.bfloat16
    assert k2_rot.shape == k2.shape and k2_rot.dtype == jnp.bfloat16
    assert jnp.allclose(q2_rot.astype(jnp.float32), q2_ref.astype(jnp.float32),
                        atol=2e-2, rtol=2e-2), "bf16 q mismatch vs reference"
    assert jnp.allclose(k2_rot.astype(jnp.float32), k2_ref.astype(jnp.float32),
                        atol=2e-2, rtol=2e-2), "bf16 k mismatch vs reference"

    print("KERNEL_OK")
</pallas_src>

<mosaic_0001>
module attributes {stable_mosaic.version = 11 : i64} {
  func.func @_rope_kernel(%arg0: i32, %arg1: i32, %arg2: memref<1x8x32xf32, #tpu.memory_space<vmem>>, %arg3: memref<1x8x32xf32, #tpu.memory_space<vmem>>, %arg4: memref<1x4x8x32xf32, #tpu.memory_space<vmem>>, %arg5: memref<1x2x8x32xf32, #tpu.memory_space<vmem>>, %arg6: memref<1x4x8x32xf32, #tpu.memory_space<vmem>>, %arg7: memref<1x2x8x32xf32, #tpu.memory_space<vmem>>) attributes {dimension_semantics = [#tpu.dimension_semantics<parallel>, #tpu.dimension_semantics<parallel>], iteration_bounds = array<i64: 2, 1>, scalar_prefetch = 0 : i64, scratch_operands = 0 : i64, tpu.core_type = #tpu.core_type<tc>, window_params = [{transform_indices = @transform_0, window_bounds = array<i64: 1, 8, 32>}, {transform_indices = @transform_1, window_bounds = array<i64: 1, 8, 32>}, {transform_indices = @transform_2, window_bounds = array<i64: 1, 4, 8, 32>}, {transform_indices = @transform_3, window_bounds = array<i64: 1, 2, 8, 32>}, {transform_indices = @transform_4, window_bounds = array<i64: 1, 4, 8, 32>}, {transform_indices = @transform_5, window_bounds = array<i64: 1, 2, 8, 32>}]} {
    %c0 = arith.constant 0 : index
    %c0_0 = arith.constant 0 : index
    %c0_1 = arith.constant 0 : index
    %0 = vector.load %arg2[%c0, %c0_0, %c0_1] : memref<1x8x32xf32, #tpu.memory_space<vmem>>, vector<1x8x32xf32>
    %1 = vector.shape_cast %0 : vector<1x8x32xf32> to vector<1x1x8x32xf32>
    %c0_2 = arith.constant 0 : index
    %c0_3 = arith.constant 0 : index
    %c0_4 = arith.constant 0 : index
    %2 = vector.load %arg3[%c0_2, %c0_3, %c0_4] : memref<1x8x32xf32, #tpu.memory_space<vmem>>, vector<1x8x32xf32>
    %3 = vector.shape_cast %2 : vector<1x8x32xf32> to vector<1x1x8x32xf32>
    %c0_5 = arith.constant 0 : index
    %c0_6 = arith.constant 0 : index
    %c0_7 = arith.constant 0 : index
    %c0_8 = arith.constant 0 : index
    %4 = vector.load %arg4[%c0_5, %c0_6, %c0_7, %c0_8] : memref<1x4x8x32xf32, #tpu.memory_space<vmem>>, vector<1x4x8x32xf32>
    %c16_i32 = arith.constant 16 : i32
    %5 = tpu.dynamic_rotate %4 by %c16_i32 dim 3 : vector<1x4x8x32xf32>, i32 -> vector<1x4x8x32xf32>
    %6 = vector.broadcast %1 : vector<1x1x8x32xf32> to vector<1x4x8x32xf32>
    %7 = arith.mulf %4, %6 : vector<1x4x8x32xf32>
    %8 = vector.broadcast %3 : vector<1x1x8x32xf32> to vector<1x4x8x32xf32>
    %9 = arith.mulf %5, %8 : vector<1x4x8x32xf32>
    %10 = arith.addf %7, %9 : vector<1x4x8x32xf32>
    %c0_9 = arith.constant 0 : index
    %c0_10 = arith.constant 0 : index
    %c0_11 = arith.constant 0 : index
    %c0_12 = arith.constant 0 : index
    %11 = vector.load %arg6[%c0_9, %c0_10, %c0_11, %c0_12] : memref<1x4x8x32xf32, #tpu.memory_space<vmem>>, vector<1x4x8x32xf32>
    tpu.vector_store %arg6[%c0_9, %c0_10, %c0_11, %c0_12], %10 {strides = array<i32>} : memref<1x4x8x32xf32, #tpu.memory_space<vmem>>, vector<1x4x8x32xf32>,
    %c0_13 = arith.constant 0 : index
    %c0_14 = arith.constant 0 : index
    %c0_15 = arith.constant 0 : index
    %c0_16 = arith.constant 0 : index
    %12 = vector.load %arg5[%c0_13, %c0_14, %c0_15, %c0_16] : memref<1x2x8x32xf32, #tpu.memory_space<vmem>>, vector<1x2x8x32xf32>
    %c16_i32_17 = arith.constant 16 : i32
    %13 = tpu.dynamic_rotate %12 by %c16_i32_17 dim 3 : vector<1x2x8x32xf32>, i32 -> vector<1x2x8x32xf32>
    %14 = vector.broadcast %1 : vector<1x1x8x32xf32> to vector<1x2x8x32xf32>
    %15 = arith.mulf %12, %14 : vector<1x2x8x32xf32>
    %16 = vector.broadcast %3 : vector<1x1x8x32xf32> to vector<1x2x8x32xf32>
    %17 = arith.mulf %13, %16 : vector<1x2x8x32xf32>
    %18 = arith.addf %15, %17 : vector<1x2x8x32xf32>
    %c0_18 = arith.constant 0 : index
    %c0_19 = arith.constant 0 : index
    %c0_20 = arith.constant 0 : index
    %c0_21 = arith.constant 0 : index
    %19 = vector.load %arg7[%c0_18, %c0_19, %c0_20, %c0_21] : memref<1x2x8x32xf32, #tpu.memory_space<vmem>>, vector<1x2x8x32xf32>
    tpu.vector_store %arg7[%c0_18, %c0_19, %c0_20, %c0_21], %18 {strides = array<i32>} : memref<1x2x8x32xf32, #tpu.memory_space<vmem>>, vector<1x2x8x32xf32>,
    return
  }
  func.func @transform_0(%arg0: i32, %arg1: i32) -> (i32, i32, i32) {
    %c0_i32 = arith.constant 0 : i32
    %c0_i32_0 = arith.constant 0 : i32
    return %arg0, %arg1, %c0_i32 : i32, i32, i32
  }
  func.func @transform_1(%arg0: i32, %arg1: i32) -> (i32, i32, i32) {
    %c0_i32 = arith.constant 0 : i32
    %c0_i32_0 = arith.constant 0 : i32
    return %arg0, %arg1, %c0_i32 : i32, i32, i32
  }
  func.func @transform_2(%arg0: i32, %arg1: i32) -> (i32, i32, i32, i32) {
    %c0_i32 = arith.constant 0 : i32
    %c0_i32_0 = arith.constant 0 : i32
    %c0_i32_1 = arith.constant 0 : i32
    return %arg0, %c0_i32, %arg1, %c0_i32_0 : i32, i32, i32, i32
  }
  func.func @transform_3(%arg0: i32, %arg1: i32) -> (i32, i32, i32, i32) {
    %c0_i32 = arith.constant 0 : i32
    %c0_i32_0 = arith.constant 0 : i32
    %c0_i32_1 = arith.constant 0 : i32
    return %arg0, %c0_i32, %arg1, %c0_i32_0 : i32, i32, i32, i32
  }
  func.func @transform_4(%arg0: i32, %arg1: i32) -> (i32, i32, i32, i32) {
    %c0_i32 = arith.constant 0 : i32
    %c0_i32_0 = arith.constant 0 : i32
    %c0_i32_1 = arith.constant 0 : i32
    return %arg0, %c0_i32, %arg1, %c0_i32_0 : i32, i32, i32, i32
  }
  func.func @transform_5(%arg0: i32, %arg1: i32) -> (i32, i32, i32, i32) {
    %c0_i32 = arith.constant 0 : i32
    %c0_i32_0 = arith.constant 0 : i32
    %c0_i32_1 = arith.constant 0 : i32
    return %arg0, %c0_i32, %arg1, %c0_i32_0 : i32, i32, i32, i32
  }
}

</mosaic_0001>

<bundles_post_ra>
// kernel: tpu_custom_call.1
= control target key start
LH: loop header
LB: loop body
LE: loop exit
PB: predicated region body
PF: predicated region fallthrough
CT: control target
= control target key end

     0   :  { %s1411_s0 = inlined_call_operand.hbm [shape: f32[2,8,32], index: 0, kind: input, shape index: {}]   ;;  %s1412_s1 = inlined_call_operand.hbm [shape: f32[2,8,32], index: 1, kind: input, shape index: {}]   ;;  %s1413_s2 = inlined_call_operand.hbm [shape: f32[2,4,8,32], index: 2, kind: input, shape index: {}]   ;;  %s1414_s3 = inlined_call_operand.hbm [shape: f32[2,2,8,32], index: 3, kind: input, shape index: {}]   ;;  %s1415_s4 = inlined_call_operand.hbm [shape: f32[2,4,8,32], index: 4, kind: output, shape index: {0}]   ;;  %s1416_s5 = inlined_call_operand.hbm [shape: f32[2,2,8,32], index: 5, kind: output, shape index: {1}]  }
   0x1   :  { %1422 = sst [smem:[#allocation23_spill]] %s1411_s0 }
   0x2   :  { %1423 = sst [smem:[#allocation24_spill]] %s1412_s1 }
   0x3   :  { %11 = vsyncpa [#allocation3], 0 }
   0x4   :  { %13 = vsyncpa [#allocation3 + $0x1], 0 }
   0x5   :  { %14 = vsyncpa [#allocation6], 0 }
   0x6   :  { %16 = vsyncpa [#allocation6 + $0x1], 0 }
   0x7   :  { %17 = vsyncpa [#allocation9], 0 }
   0x8   :  { %19 = vsyncpa [#allocation9 + $0x1], 0 }
   0x9   :  { %20 = vsyncpa [#allocation4], 0 }
   0xa   :  { %22 = vsyncpa [#allocation4 + $0x1], 0 }
   0xb   :  { %23 = vsyncpa [#allocation12], 0 }
   0xc   :  { %25 = vsyncpa [#allocation12 + $0x1], 0  ;;  %s1132_s18 = smov 0   ;;  %s1134_s19 = smov 0  }
   0xd   :  { %s1136_s20 = smov 0   ;;  %s1138_s21 = smov 0  }
   0xe   :  { %s1140_s22 = smov 0   ;;  %s1142_s23 = smov 0  }
   0xf LB: > { %1424 = sst [smem:[#allocation18_spill]] %s1081_s20  ;;  %s1163_s24 = sadd.s32 4294967295, %s1093_s23   ;;  %s1093_s23 = sphi %s1142_s23, %s31_s23   ;;  %s1089_s22 = sphi %s1140_s22, %s1445_s22   ;;  %s1085_s21 = sphi %s1138_s21, %s1444_s21   ;;  %s1081_s20 = sphi %s1136_s20, %s1440_s20   ;;  %s1077_s19 = sphi %s1134_s19, %s1443_s19   ;;  %s1073_s18 = sphi %s1132_s18, %s1442_s18  }
  0x10   : > { %1425 = sst [smem:[#allocation19_spill]] %s1093_s23  ;;  %s730_s25 = sadd.s32 4294967294, %s1093_s23  }
  0x11   : > { %s43_s26 = sadd.s32 1, %s1089_s22  ;;  %s52_s27 = sadd.s32 1, %s1081_s20 }
  0x12   : > { %p45_p0 = scmp.ge.s32.totalorder %s43_s26, 2  ;;  %p59_p1 = scmp.ne.s32.totalorder %s1081_s20, %s1077_s19 }
  0x13   : > { %p60_p2 = scmp.eq.s32.totalorder %s1093_s23, 0  ;;  %p65_p3 = scmp.ne.s32.totalorder %s1077_s19, %s1073_s18 }
  0x14   : > { %s1447_s26 = smov (%p45_p0, %s43_s26), 0  ;;  %p66_p5 = scmp.eq.s32.totalorder %s1163_s24, 0 }
  0x15   : > { %1426 = sst [smem:[#allocation20_spill]] %s1447_s26  ;;  %p1175_p4 = por %p60_p2, %p59_p1 }
  0x16   : > { %s47_s29 = ssub.s32 %s1089_s22, %s1447_s26  ;;  %p175_p6 = scmp.eq.s32.totalorder %s1163_s24, 1 }
  0x17   : > { %p50_p7 = scmp.eq.s32.totalorder %s47_s29, 0  ;;  %p1183_p8 = por %p66_p5, %p65_p3 }
  0x18   : > { %p1187_p9 = por %p175_p6, %p59_p1  ;;  %p181_p10 = scmp.eq.s32.totalorder %s730_s25, 1 }
  0x19   : > { %s1192_s7 = scalar_select %p50_p7, %s1081_s20, %s52_s27  }
  0x1a   : > { %p1194_p11 = por %p181_p10, %p65_p3  ;;  %p732_p12 = scmp.ge.s32.totalorder %s1093_s23, 2 }
  0x1b   : > { %1430 = sst [smem:[#allocation21_spill]] %s1192_s7  ;;  %p794_p13 = scmp.lt.s32.totalorder %s1093_s23, 2 }
  0x1c   : > { %s1431_s8 = scalar_select %p1194_p11, 1, 0 }
  0x1d   : > { %s1201_s9 = sand.u32 1, %s1081_s20   ;;  %s734_s11 = sshll.u32 %s1089_s22, 3 }
  0x1e   : > { %1432 = sst [smem:[#allocation22_spill]] %s1431_s8  ;;  %s733_s10 = sshll.u32 %s1201_s9, 3 }
  0x1f   : > { %p1207_p0 = pnand %p794_p13, %p1175_p4  ;;  %s249_s13 = sand.u32 1, %s1093_s23  }
  0x20   : > { %s1434_s1 = sld [smem:[#allocation24_spill]]  ;;  %s253_s25 = scalar_lea.vmem [#allocation5], %s733_s10 }
  0x21   : > { %s262_s27 = sshll.u32 %s253_s25, 4  ;;  %s250_s28 = scalar_lea.sflag [#allocation6], %s249_s13  ;;  %s263_s27 = int_to_ptr.vmem [resolvable:$true] %s262_s27 }
  0x22   : > { %p743_p1 = scmp.ge.s32.totalorder %s1093_s23, 1  ;;  %p313_p2 = scmp.lt.s32.totalorder %s1093_s23, 3 }
  0x23   : > { %s1436_s0 = sld [smem:[#allocation23_spill]]  ;;  %s233_s26 = scalar_lea.vmem [#allocation2], %s733_s10 }
  0x24   : > { %p1219_p3 = pnand %p743_p1, %p313_p2  ;;  %s242_s25 = sshll.u32 %s233_s26, 4  ;;  %s243_s25 = int_to_ptr.vmem [resolvable:$true] %s242_s25 }
  0x25   : > { %s230_s13 = scalar_lea.sflag [#allocation3], %s1201_s9  ;;  %s1095_s26 = smov 128  }
  0x26   : > { %s258_s16 = scalar_lea.hbm %s1434_s1, %s734_s11  ;;  %s1096_s14 = smov 8  }
  0x27   : > { %s260_s17 = sshll.u32 %s258_s16, 4  ;;  %s740_s15 = sshll.u32 %s1201_s9, 4  ;;  %s261_s17 = int_to_ptr.hbm [resolvable:$true] %s260_s17 }
  0x28   : > { %780 = dma.hbm_to_vmem [thread:$0]  (!%p1207_p0), %s261_s17, 128, %s263_s27, %s250_s28  }
  0x29   : > { %s238_s16 = scalar_lea.hbm %s1436_s0, %s734_s11  ;;  %s737_s17 = sshll.u32 %s1201_s9, 5 }
  0x2a   : > { %s240_s1 = sshll.u32 %s238_s16, 4  ;;  %s758_s27 = sshll.u32 %s1089_s22, 5  ;;  %s241_s1 = int_to_ptr.hbm [resolvable:$true] %s240_s1 }
  0x2b   : > { %777 = dma.hbm_to_vmem [thread:$0]  (!%p1207_p0), %s241_s1, 128, %s243_s25, %s230_s13  }
  0x2c   : > { %s279_s23 = scalar_lea.hbm %s1413_s2, %s758_s27  ;;  %s273_s11 = scalar_lea.vmem [#allocation7], %s737_s17 }
  0x2d   : > { %s280_s8 = sshll.u32 %s279_s23, 4  ;;  %s282_s10 = sshll.u32 %s273_s11, 4  ;;  %s281_s8 = int_to_ptr.hbm [resolvable:$true] %s280_s8  ;;  %s283_s10 = int_to_ptr.vmem [resolvable:$true] %s282_s10 }
  0x2e   : > { %783 = dma.hbm_to_vmem [thread:$0]  (!%p1207_p0), %s281_s8, 512, %s283_s10, %s250_s28, %s1095_s26, %s1095_s26, %s1096_s14  }
  0x2f   : > { %s759_s16 = sshll.u32 %s1089_s22, 4  ;;  %s296_s0 = scalar_lea.vmem [#allocation8], %s740_s15 }
  0x30   : > { %s302_s13 = scalar_lea.hbm %s1414_s3, %s759_s16  ;;  %s305_s20 = sshll.u32 %s296_s0, 4  ;;  %s306_s20 = int_to_ptr.vmem [resolvable:$true] %s305_s20 }
  0x31   : > { %s303_s7 = sshll.u32 %s302_s13, 4  ;;  %s293_s23 = scalar_lea.sflag [#allocation9], %s1201_s9  ;;  %s304_s7 = int_to_ptr.hbm [resolvable:$true] %s303_s7 }
  0x32   : > { %786 = dma.hbm_to_vmem [thread:$0]  (!%p1207_p0), %s304_s7, 256, %s306_s20, %s293_s23, %s1095_s26, %s1095_s26, %s1096_s14  }
  0x33   : > { %317 = sbr.rel (%p1219_p3) target bundleno = 456 (0x1c8), region = 36  ;;  %s1247_s8 = sand.u32 (!%p1219_p3), 1, %s1077_s19  }
  0x34   : > { %s744_s28 = sshll.u32 (!%p1219_p3), %s1247_s8, 3  ;;  %s320_s17 = scalar_lea.sflag (!%p1219_p3), [#allocation3], %s1247_s8 }
  0x35   : > { %s1251_s27 = scalar_lea.vmem (!%p1219_p3), [#allocation2], %s744_s28 }
  0x38   : > { %1052 = dma.done.wait (%p1183_p8), %s320_s17, 128  }
  0x39   : > { %1054 = vsyncadd (%p1183_p8), %s320_s17, 4294967168  ;;  %s329_s0 = sand.u32 1, %s1163_s24   ;;  %s1258_s12 = scalar_lea.vmem [#allocation5], %s744_s28 }
  0x3a   : > { %s330_s9 = scalar_lea.sflag [#allocation6], %s329_s0 }
  0x3b   : > { %1056 = dma.done.wait (%p1183_p8), %s330_s9, 640  }
  0x3c   : > { %1058 = vsyncadd (%p1183_p8), %s330_s9, 4294966656  ;;  %s746_s29 = sshll.u32 %s1247_s8, 5  ;;  %s747_s11 = sshll.u32 %s1247_s8, 4 }
  0x3d   : > { %s343_s10 = scalar_lea.vmem [#allocation7], %s746_s29  ;;  %s350_s26 = scalar_lea.sflag [#allocation9], %s1247_s8 }
  0x3e   : > { %s353_s24 = scalar_lea.vmem [#allocation8], %s747_s11 }
  0x3f   : > { %1060 = dma.done.wait (%p1183_p8), %s350_s26, 256  }
  0x40   : > { %1062 = vsyncadd (%p1183_p8), %s350_s26, 4294967040  ;;  %v1275_v0 = vld [vmem:[%s343_s10 + $0x10] sm:$0xff]  ;;  %v1277_v1 = vld [vmem:[%s343_s10] sm:$0xff]  ;;  %s1097_s14 = smov 32   ;;  %vm407_vm0 = vcmask 1047808   ;;  %s1098_s30 = smov 16  }
  0x41   : > { %414 = vrot.lane.b32.xlu1 %v1275_v0, %s1097_s14  ;;  %408 = vrot.lane.b32.xlu0 %v1277_v1, %s1097_s14  ;;  %v1283_v2 = vld [vmem:[%s353_s24] sm:$0xff]  ;;  %v1287_v3 = vld [vmem:[%s343_s10 + $0x18] sm:$0xff]  ;;  %s1099_s15 = smov 112   ;;  %vm464_vm1 = vcmask 261120   ;;  %s1328_s16 = scalar_lea.vmem [#allocation10], %s746_s29 }
  0x42   : > { %471 = vrot.lane.b32.xlu2 %v1283_v2, %s1097_s14  ;;  %v404_v4 = vld [vmem:[%s343_s10 + $0x8] sm:$0xff]  ;;  %v402_v18 = vld [vmem:[%s1258_s12] sm:$0xff]  ;;  %s400_s1 = scalar_lea.vmem [#allocation11], %s747_s11  ;;  %s760_s25 = sshll.u32 %s1085_s21, 5 }
  0x43   : > { %v1289_v5 = vld [vmem:[%s353_s24 + $0x8] sm:$0xff]  ;;  %v401_v38 = vld [vmem:[%s1251_s27] sm:$0xff]  ;;  %s761_s13 = sshll.u32 %s1085_s21, 4  ;;  %s517_s23 = scalar_lea.hbm %s1415_s4, %s760_s25 }
  0x44   : > { %v433_v39 = vmul.f32 %v404_v4, %v401_v38  ;;  %v483_v42 = vmul.f32 %v1283_v2, %v401_v38  ;;  %v434_v45 = vmul.f32 %v1275_v0, %v401_v38  ;;  %v432_v46 = vmul.f32 %v1277_v1, %v401_v38  ;;  %s518_s28 = sshll.u32 %s1328_s16, 4  ;;  %s536_s17 = sshll.u32 %s400_s1, 4  ;;  %s1353_s28 = int_to_ptr.vmem [resolvable:$true] %s518_s28  ;;  %s1355_s17 = int_to_ptr.vmem [resolvable:$true] %s536_s17 }
  0x45   : > { %v484_v51 = vmul.f32 %v1289_v5, %v401_v38  ;;  %s535_s9 = scalar_lea.hbm %s1416_s5, %s761_s13  ;;  %v435_v52 = vmul.f32 %v1287_v3, %v401_v38  ;;  %s520_s21 = sshll.u32 %s517_s23, 4  ;;  %s521_s21 = int_to_ptr.hbm [resolvable:$true] %s520_s21 }
  0x46   : > { %s538_s12 = sshll.u32 %s535_s9, 4  ;;  %s500_s29 = scalar_lea.sflag [#allocation4], %s1247_s8  ;;  %s1358_s12 = int_to_ptr.hbm [resolvable:$true] %s538_s12 }
  0x47   : > { %s985_s11 = sshra.s32 %s521_s21, 4  ;;  %s986_s11 = int_to_ptr.hbm [resolvable:$true] %s985_s11 }
  0x48   : > { %s987_s10 = scalar_lea.hbm %s986_s11, 32  ;;  %p992_p7 = scmp.lt.s32.totalorder %s986_s11, %s1415_s4 }
  0x49   : > { %417 = vrot.lane.b32.xlu1 %v1287_v3, %s1097_s14  ;;  %411 = vrot.lane.b32.xlu0 %v404_v4, %s1097_s14  ;;  %p988_p4 = scmp.ne.s32.totalorder %s986_s11, %s987_s10 }
  0x4a   : > { %474 = vrot.lane.b32.xlu2 %v1289_v5, %s1097_s14 }
  0x4b   : > { %p989_p5 = pnand %p988_p4, %p1187_p9 }
  0x4d   : > { %p990_p6 = pneg %p989_p5 }
  0x9c   : > { %v472_v6 = vpop.permute.xlu2 %471 }
  0x9d   : > { %v473_v17 = vsel %vm407_vm0, %v472_v6, %v1283_v2 }
  0xa4   : > { %v475_v11 = vpop.permute.xlu2 %474 }
  0xa5   : > { %v476_v14 = vsel %vm407_vm0, %v475_v11, %v1289_v5 }
  0xb3   : > { %v415_v7 = vpop.permute.xlu1 %414  ;;  %v409_v8 = vpop.permute.xlu0 %408 }
  0xb4   : > { %v416_v9 = vsel %vm407_vm0, %v415_v7, %v1275_v0  ;;  %v410_v10 = vsel %vm407_vm0, %v409_v8, %v1277_v1 }
  0xb5   : > { %424 = vrot.lane.b32.xlu2 %v416_v9, %s1097_s14  ;;  %420 = vrot.lane.b32.xlu0 %v410_v10, %s1097_s14 }
  0xbb   : > { %v418_v12 = vpop.permute.xlu1 %417  ;;  %v412_v13 = vpop.permute.xlu0 %411 }
  0xbc   : > { %v419_v15 = vsel %vm407_vm0, %v418_v12, %v1287_v3  ;;  %v413_v16 = vsel %vm407_vm0, %v412_v13, %v404_v4 }
  0xbd   : > { %426 = vrot.lane.b32.xlu0 %v419_v15, %s1097_s14  ;;  %422 = vrot.lane.b32.xlu1 %v413_v16, %s1097_s14 }
  0xbe   : > { %479 = vrot.lane.b32.xlu2 %v476_v14, %s1097_s14 }
  0xc5   : > { %477 = vrot.lane.b32.xlu1 %v473_v17, %s1097_s14  ;;  %437 = vrot.lane.b32.xlu0 %v402_v18, %s1098_s30  ;;  %s991_s14 = scalar_lea.hbm %s1415_s4, 64 }
  0xc6   : > { %p993_p8 = scmp.lt.s32.totalorder %s991_s14, %s987_s10 }
  0xc8   : > { %p994_p10 = por %p993_p8, %p992_p7 }
  0xca   : > { %p995_p13 = pnand %p994_p10, %p990_p6 }
 0x10f   : > { %v425_v22 = vpop.permute.xlu2 %424 }
 0x110   : > { %v430_v24 = vsel %vm407_vm0, %v425_v22, %v1275_v0 }
 0x118   : > { %v480_v30 = vpop.permute.xlu2 %479 }
 0x119   : > { %v482_v32 = vsel %vm407_vm0, %v480_v30, %v1289_v5 }
 0x127   : > { %v421_v19 = vpop.permute.xlu0 %420 }
 0x128   : > { %v428_v25 = vsel %vm407_vm0, %v421_v19, %v1277_v1 }
 0x12f   : > { %v427_v20 = vpop.permute.xlu0 %426  ;;  %v423_v21 = vpop.permute.xlu1 %422 }
 0x130   : > { %v429_v23 = vsel %vm407_vm0, %v423_v21, %v404_v4  ;;  %v431_v34 = vsel %vm407_vm0, %v427_v20, %v1287_v3 }
 0x137   : > { %v438_v26 = vpop.permute.xlu0 %437  ;;  %v478_v31 = vpop.permute.xlu1 %477 }
 0x138   : > { %v442_v27 = vmul.f32 %v438_v26, %v430_v24  ;;  %v441_v28 = vmul.f32 %v438_v26, %v429_v23  ;;  %v440_v29 = vmul.f32 %v438_v26, %v428_v25  ;;  %v481_v33 = vsel %vm407_vm0, %v478_v31, %v1283_v2 }
 0x139   : > { %v486_v35 = vmul.f32 %v482_v32, %v438_v26  ;;  %v485_v36 = vmul.f32 %v481_v33, %v438_v26  ;;  %v443_v37 = vmul.f32 %v438_v26, %v431_v34 }
 0x13a   : > { %452 = vrot.lane.b32.xlu0 %v442_v27, %s1099_s15  ;;  %450 = vrot.lane.b32.xlu2 %v441_v28, %s1099_s15 }
 0x13b   : > { %448 = vrot.lane.b32.xlu1 %v440_v29, %s1099_s15 }
 0x142   : > { %491 = vrot.lane.b32.xlu0 %v486_v35, %s1099_s15  ;;  %489 = vrot.lane.b32.xlu2 %v485_v36, %s1099_s15 }
 0x143   : > { %454 = vrot.lane.b32.xlu1 %v443_v37, %s1099_s15 }
 0x194   : > { %v451_v40 = vpop.permute.xlu2 %450 }
 0x195   : > { %v461_v41 = vadd.f32 %v451_v40, %v433_v39 }
 0x197   : > { %466 = vst.msk [vmem:[%s1328_s16 + $0x8] sm:$0xff] %vm464_vm1, %v461_v41 }
 0x19c   : > { %v490_v43 = vpop.permute.xlu2 %489 }
 0x19d   : > { %v495_v44 = vadd.f32 %v490_v43, %v483_v42 }
 0x19f   : > { %497 = vst.msk [vmem:[%s400_s1] sm:$0xff] %vm464_vm1, %v495_v44 }
 0x1ac   : > { %v453_v47 = vpop.permute.xlu0 %452 }
 0x1ad   : > { %v462_v48 = vadd.f32 %v453_v47, %v434_v45  ;;  %v449_v49 = vpop.permute.xlu1 %448 }
 0x1ae   : > { %v460_v50 = vadd.f32 %v449_v49, %v432_v46 }
 0x1af   : > { %467 = vst.msk [vmem:[%s1328_s16 + $0x10] sm:$0xff] %vm464_vm1, %v462_v48 }
 0x1b0   : > { %465 = vst.msk [vmem:[%s1328_s16] sm:$0xff] %vm464_vm1, %v460_v50 }
 0x1b4   : > { %v492_v53 = vpop.permute.xlu0 %491 }
 0x1b5   : > { %v455_v54 = vpop.permute.xlu1 %454  ;;  %v496_v55 = vadd.f32 %v492_v53, %v484_v51 }
 0x1b6   : > { %v463_v56 = vadd.f32 %v455_v54, %v435_v52 }
 0x1b7   : > { %498 = vst.msk [vmem:[%s400_s1 + $0x8] sm:$0xff] %vm464_vm1, %v496_v55 }
 0x1b8   : > { %468 = vst.msk [vmem:[%s1328_s16 + $0x18] sm:$0xff] %vm464_vm1, %v463_v56 }
 0x1b9   : > { %998 = shalt.err (!%p995_p13)
}
 0x1ba   : > { %s1100_s16 = smov 128   ;;  %s1101_s1 = smov 8  }
 0x1bb   : > { %770 = dma.vmem_to_hbm [thread:$0]  (%p1187_p9), %s1353_s28, 512, %s521_s21, %s500_s29, %s1100_s16, %s1100_s16, %s1101_s1  }
 0x1bc   : > { %s505_s25 = scalar_lea.sflag [#allocation12], %s1247_s8  ;;  %s1013_s13 = sshra.s32 %s1358_s12, 4  ;;  %s1014_s13 = int_to_ptr.hbm [resolvable:$true] %s1013_s13 }
 0x1bd   : > { %s1015_s20 = scalar_lea.hbm %s1014_s13, 16  ;;  %s1019_s27 = scalar_lea.hbm %s1416_s5, 32 }
 0x1be   : > { %p1016_p0 = scmp.ne.s32.totalorder %s1014_s13, %s1015_s20  ;;  %p1020_p3 = scmp.lt.s32.totalorder %s1014_s13, %s1416_s5 }
 0x1bf   : > { %p1021_p4 = scmp.lt.s32.totalorder %s1019_s27, %s1015_s20 }
 0x1c0   : > { %p1017_p1 = pnand %p1016_p0, %p1187_p9 }
 0x1c1   : > { %p1022_p5 = por %p1021_p4, %p1020_p3 }
 0x1c2   : > { %p1018_p2 = pneg %p1017_p1 }
 0x1c4   : > { %p1023_p6 = pnand %p1022_p5, %p1018_p2 }
 0x1c6   : > { %1026 = shalt.err (!%p1023_p6)
}
 0x1c7   : > { %771 = dma.vmem_to_hbm [thread:$0]  (%p1187_p9), %s1355_s17, 256, %s1358_s12, %s505_s25, %s1100_s16, %s1100_s16, %s1101_s1  }
 0x1c8 PF: > { %s1438_s28 = sld [smem:[#allocation19_spill]]  ;;  %s553_s21 = sand.u32 1, %s1073_s18  }
 0x1c9   : > { %p788_p7 = pnand %p732_p12, %p1194_p11  ;;  %s554_s29 = scalar_lea.sflag [#allocation4], %s553_s21 }
 0x1cb   : > { %p789_p8 = pneg %p788_p7 }
 0x1cd   : > { %1064 = dma.done.wait (%p789_p8), %s554_s29, 512  }
 0x1ce   : > { %1066 = vsyncadd (%p789_p8), %s554_s29, 4294966784  ;;  %s564_s11 = scalar_lea.sflag [#allocation12], %s553_s21 }
 0x1cf   : > { %1068 = dma.done.wait (%p789_p8), %s564_s11, 256  }
 0x1d0   : > { %1070 = vsyncadd (%p789_p8), %s564_s11, 4294967040  ;;  %s31_s23 = sadd.s32 1, %s1438_s28   ;;  %s1439_s6 = sld [smem:[#allocation18_spill]] }
 0x1d1   : > { %p28_p10 = scmp.ge.s32.totalorder %s31_s23, 4   ;;  %s1440_s20 = sld [smem:[#allocation21_spill]] }
 0x1d2   : > { %s1441_s17 = sld [smem:[#allocation20_spill]]  ;;  %s1442_s18 = smov %s1077_s19 }
 0x1d3   : > { %s1444_s21 = smov %s1089_s22 }
 0x1d4   :  { %30 = sbr.rel (!%p28_p10) target bundleno = 15 (0xf), region = 135 }
 0x1d6   : > { %s1443_s19 = smov %s1439_s6 }
 0x1d8   : > { %s1445_s22 = smov %s1441_s17 }
 0x1d9   :  { %570 = vsyncpa [#allocation3], 1 }
 0x1da   :  { %572 = vsyncpa [#allocation3 + $0x1], 1 }
 0x1db   :  { %573 = vsyncpa [#allocation6], 1 }
 0x1dc   :  { %575 = vsyncpa [#allocation6 + $0x1], 1 }
 0x1dd   :  { %576 = vsyncpa [#allocation9], 1 }
 0x1de   :  { %578 = vsyncpa [#allocation9 + $0x1], 1 }
 0x1df   :  { %579 = vsyncpa [#allocation4], 1 }
 0x1e0   :  { %581 = vsyncpa [#allocation4 + $0x1], 1 }
 0x1e1   :  { %582 = vsyncpa [#allocation12], 1 }
 0x1e2   :  { %584 = vsyncpa [#allocation12 + $0x1], 1 }

</bundles_post_ra>
